<compile_context>
chip_gen: v5e
topology: v5e:2x2
jax: 0.10.0
libtpu: 0.0.40
codegen_flags: <defaults>
</compile_context>

<pallas_src>
import functools

import numpy as np
import jax
import jax.numpy as jnp
from jax.experimental import pallas as pl
from jax.experimental.pallas import tpu as pltpu

KS = 7            # kernel_size of the module (default 7)
PAD = KS // 2


@functools.lru_cache(maxsize=None)
def _roll_matches_jnp():
    """One-off probe of pltpu.roll's shift convention (cached)."""
    def probe(x_ref, o_ref):
        o_ref[...] = pltpu.roll(x_ref[...], 1, axis=1)

    x = jnp.broadcast_to(jnp.arange(128, dtype=jnp.float32), (8, 128))
    y = pl.pallas_call(
        probe, out_shape=jax.ShapeDtypeStruct((8, 128), jnp.float32))(x)
    # Under the jnp.roll convention, element 127 moves to position 0.
    return bool(np.asarray(y)[0, 0] == 127.0)


def _make_kernel(H, W, K, roll_sign):
    P = K // 2
    L = H * W
    KK = K * K

    def kernel(x_ref, w_ref, rc_ref, o_ref):
        # x_ref : (Bt, C, L)  f32   VMEM  -- unpadded, spatially flattened x
        # w_ref : (2*K*K,)    f32   SMEM  -- [avg taps * (1/C), max taps]
        # rc_ref: (2, 1, L)   int32 VMEM  -- row / col index of each flat pos
        # o_ref : (Bt, 1, L)  f32   VMEM
        x = x_ref[...].astype(jnp.float32)
        s = jnp.sum(x, axis=1, keepdims=True)   # (Bt,1,L) channel sum
        m = jnp.max(x, axis=1, keepdims=True)   # (Bt,1,L) channel max

        rc = rc_ref[...]
        row = rc[0:1]                            # (1,1,L)
        col = rc[1:2]                            # (1,1,L)

        # Border masks (shared across taps): valid iff the shifted source
        # pixel lies inside the image -> reproduces the conv's zero padding.
        row_ok = [jnp.logical_and(row + oi >= 0, row + oi < H)
                  for oi in range(-P, P + 1)]
        col_ok = [jnp.logical_and(col + oj >= 0, col + oj < W)
                  for oj in range(-P, P + 1)]

        acc = jnp.zeros(s.shape, jnp.float32)
        for oi in range(-P, P + 1):
            for oj in range(-P, P + 1):
                tap = (oi + P) * K + (oj + P)
                wa = w_ref[tap]          # avg-channel weight (already / C)
                wm = w_ref[KK + tap]     # max-channel weight
                k = oi * W + oj          # flat-index offset of this tap
                if k == 0:
                    s_sh, m_sh = s, m
                else:
                    r = (roll_sign * -k) % L
                    s_sh = pltpu.roll(s, r, axis=2)
                    m_sh = pltpu.roll(m, r, axis=2)
                ok = jnp.logical_and(row_ok[oi + P], col_ok[oj + P])
                acc = acc + jnp.where(ok, wa * s_sh + wm * m_sh, 0.0)

        o_ref[...] = jax.nn.sigmoid(acc).astype(o_ref.dtype)

    return kernel


def _pick_batch_tile(N, C, L, max_tile=8):
    """Batch several images per grid step (amortize step overhead) while
    keeping >=2 grid steps so both TensorCores get work on v7x."""
    if N <= 1:
        return 1
    target_elems = (1 << 20) // 4          # ~1 MiB of f32 input per step
    best = 1
    for bt in range(1, min(N // 2, max_tile) + 1):
        if N % bt == 0 and bt * C * L <= target_elems:
            best = bt
    return best


def spatial_attention(x, conv_w, *, batch_tile=None):
    """x: (N, C, H, W) float32, conv_w: (1, 2, K, K) -> (N, 1, H, W)."""
    N, C, H, W = x.shape
    assert conv_w.shape[0] == 1 and conv_w.shape[1] == 2
    K = conv_w.shape[-1]
    L = H * W

    # Free reshape only -- no padded copy of x in HBM.
    x_flat = x.reshape(N, C, L).astype(jnp.float32)

    # Conv weights -> flat SMEM vector; fold 1/C of the channel mean into the
    # avg-channel taps so the kernel only needs a channel *sum*.
    w_flat = jnp.concatenate(
        [conv_w[0, 0].reshape(-1) / C, conv_w[0, 1].reshape(-1)]
    ).astype(jnp.float32)                                      # (2*K*K,)

    # Row / column index of every flattened spatial position (host-built).
    rr, cc = np.divmod(np.arange(L, dtype=np.int32), W)
    rc = jnp.asarray(np.stack([rr, cc]).reshape(2, 1, L), dtype=jnp.int32)

    Bt = batch_tile if batch_tile is not None else _pick_batch_tile(N, C, L)
    grid = (N // Bt,)

    kernel = _make_kernel(H, W, K, 1 if _roll_matches_jnp() else -1)

    out = pl.pallas_call(
        kernel,
        out_shape=jax.ShapeDtypeStruct((N, 1, L), jnp.float32),
        grid=grid,
        in_specs=[
            pl.BlockSpec((Bt, C, L), lambda n: (n, 0, 0)),       # batch tile
            pl.BlockSpec(memory_space=pltpu.MemorySpace.SMEM),   # 98 weights
            pl.BlockSpec((2, 1, L), lambda n: (0, 0, 0)),        # row/col idx
        ],
        out_specs=pl.BlockSpec((Bt, 1, L), lambda n: (n, 0, 0)),
        compiler_params=pltpu.CompilerParams(
            dimension_semantics=("parallel",)),
    )(x_flat, w_flat, rc)

    return out.reshape(N, 1, H, W)


def _reference(x, conv_w):
    avg = jnp.mean(x, axis=1, keepdims=True)
    mx = jnp.max(x, axis=1, keepdims=True)
    f = jnp.concatenate([avg, mx], axis=1)
    y = jax.lax.conv_general_dilated(
        f, conv_w, window_strides=(1, 1), padding=[(PAD, PAD), (PAD, PAD)],
        dimension_numbers=("NCHW", "OIHW", "NCHW"))
    return jax.nn.sigmoid(y)


if __name__ == "__main__":
    key = jax.random.PRNGKey(0)
    kx, kw = jax.random.split(key)

    # Small shapes consistent with the module: batch=2, channels=4, spatial=16.
    x = jax.random.normal(kx, (2, 4, 16, 16), dtype=jnp.float32)

    # Deterministic synthetic conv weight, shape (out=1, in=2, 7, 7), no bias.
    fan_in = 2 * KS * KS
    conv_w = jax.random.normal(kw, (1, 2, KS, KS), dtype=jnp.float32) / np.sqrt(fan_in)

    out = jax.block_until_ready(spatial_attention(x, conv_w))

    ref = jax.block_until_ready(_reference(x, conv_w))
    np.testing.assert_allclose(np.asarray(out), np.asarray(ref), atol=1e-5, rtol=1e-4)
    assert out.shape == (2, 1, 16, 16)

    print("KERNEL_OK")
</pallas_src>

<mosaic_0001>
module attributes {stable_mosaic.version = 11 : i64} {
  func.func @probe(%arg0: memref<8x128xf32, #tpu.memory_space<vmem>>, %arg1: memref<8x128xf32, #tpu.memory_space<vmem>>) attributes {dimension_semantics = [], scalar_prefetch = 0 : i64, scratch_operands = 0 : i64, tpu.core_type = #tpu.core_type<tc>} {
    %c0 = arith.constant 0 : index
    %c0_0 = arith.constant 0 : index
    %0 = vector.load %arg0[%c0, %c0_0] : memref<8x128xf32, #tpu.memory_space<vmem>>, vector<8x128xf32>
    %c1_i32 = arith.constant 1 : i32
    %1 = tpu.dynamic_rotate %0 by %c1_i32 dim 1 : vector<8x128xf32>, i32 -> vector<8x128xf32>
    %c0_1 = arith.constant 0 : index
    %c0_2 = arith.constant 0 : index
    %2 = vector.load %arg1[%c0_1, %c0_2] : memref<8x128xf32, #tpu.memory_space<vmem>>, vector<8x128xf32>
    tpu.vector_store %arg1[%c0_1, %c0_2], %1 {strides = array<i32>} : memref<8x128xf32, #tpu.memory_space<vmem>>, vector<8x128xf32>,
    return
  }
}

</mosaic_0001>

<bundles_post_ra>
// kernel: tpu_custom_call.1
= control target key start
LH: loop header
LB: loop body
LE: loop exit
PB: predicated region body
PF: predicated region fallthrough
CT: control target
= control target key end

     0   :  { %6 = vsyncpa [#allocation3], 0  ;;  %s118_s0 = inlined_call_operand.hbm [shape: f32[8,128], index: 0, kind: input, shape index: {}]   ;;  %s119_s1 = inlined_call_operand.hbm [shape: f32[8,128], index: 1, kind: output, shape index: {}]  }
   0x1   :  { %7 = vsyncpa [#allocation4], 0  ;;  %s13_s8 = sshll.u32 %s118_s0, 4  ;;  %s99_s9 = smov [#allocation2]   ;;  %s14_s8 = int_to_ptr.hbm [resolvable:$true] %s13_s8 }
   0x2   :  { %s15_s10 = sshll.u32 %s99_s9, 4  ;;  %s16_s10 = int_to_ptr.vmem [resolvable:$true] %s15_s10 }
   0x3   :  { %18 = dma.hbm_to_vmem [thread:$0]  %s14_s8, 128, %s16_s10, [#allocation3]  }
   0x4   :  { %95 = dma.done.wait [#allocation3], 128  }
   0x5   :  { %96 = vsyncadd [#allocation3], 4294967168  ;;  %v23_v0 = vld [vmem:[#allocation2] sm:$0xff]  ;;  %s100_s11 = smov 1   ;;  %s101_s12 = smov [#allocation5]  }
   0x6   :  { %24 = vrot.lane.b32.xlu0 %v23_v0, %s100_s11  ;;  %s32_s13 = sshll.u32 %s101_s12, 4  ;;  %s34_s16 = sshll.u32 %s119_s1, 4  ;;  %s33_s13 = int_to_ptr.vmem [resolvable:$true] %s32_s13  ;;  %s35_s16 = int_to_ptr.hbm [resolvable:$true] %s34_s16 }
  0x78   :  { %v25_v1 = vpop.permute.xlu0 %24 }
  0x79   :  { %26 = vst [vmem:[#allocation5] sm:$0xff] %v25_v1 }
  0x7a   :  { %37 = dma.vmem_to_hbm [thread:$0]  %s33_s13, 128, %s35_s16, [#allocation4]  }
  0x7b   :  { %97 = dma.done.wait [#allocation4], 128  }
  0x7c   :  { %98 = vsyncadd [#allocation4], 4294967168 }
  0x7d   :  { %42 = vsyncpa [#allocation3], 1 }
  0x7e   :  { %43 = vsyncpa [#allocation4], 1 }

</bundles_post_ra>
